<compile_context>
chip_gen: v5e
topology: v5e:2x2
jax: 0.10.0
libtpu: 0.0.40
codegen_flags: <defaults>
</compile_context>

<pallas_src>
import functools

import jax
import jax.numpy as jnp
from jax.experimental import pallas as pl
from jax.experimental.pallas import tpu as pltpu


def se_block_kernel(x_ref, w1_ref, b1_ref, w2_ref, b2_ref, o_ref, *, inv_hw):
    # x_ref / o_ref: (BT, C, HW_pad).  Padding lanes are zero, so summing the
    # full lane axis and scaling by 1/true_HW gives the exact spatial mean.

    # ---- squeeze: global average pool over the spatial (lane) axis --------
    y = jnp.sum(x_ref[...].astype(jnp.float32), axis=-1) * inv_hw      # (BT, C)

    # ---- excitation MLP (tiny; hidden under the block DMA) ----------------
    h = jnp.dot(y, w1_ref[...].astype(jnp.float32),
                preferred_element_type=jnp.float32)
    h = h + b1_ref[...].astype(jnp.float32)
    h = h * jax.nn.sigmoid(h)                                          # SiLU
    s = jnp.dot(h, w2_ref[...].astype(jnp.float32),
                preferred_element_type=jnp.float32)
    s = jax.nn.sigmoid(s + b2_ref[...].astype(jnp.float32))            # (BT, C)

    # ---- scale: re-read x in its native dtype (second VMEM read is cheap),
    #      multiply by s cast to that dtype, lane-dense store ---------------
    x = x_ref[...]
    o_ref[...] = (x * s[:, :, None].astype(x.dtype)).astype(o_ref.dtype)


def _tpu_vmem_capacity_bytes():
    """Physical VMEM per core; conservative (v7x-sized) fallback if unknown."""
    try:
        cap = getattr(pltpu.get_tpu_info(), "vmem_capacity_bytes", None)
        if cap:
            return int(cap)
    except Exception:
        pass
    return 64 << 20


def _pick_batch_tile(batch, per_sample_bytes, target_bytes, min_steps):
    """Largest batch tile whose block fits target_bytes and leaves >= min_steps."""
    required_steps = min(min_steps, batch)
    best = 1
    for bt in range(1, batch + 1):
        if batch % bt:
            continue
        if bt > 1 and bt * per_sample_bytes > target_bytes:
            continue
        if batch // bt < required_steps:
            continue
        best = max(best, bt)
    return best


def se_block(x_nchw, w1, b1, w2, b2):
    """x_nchw: (B, C, H, W); returns (B, C, H, W)."""
    B, C, H, W = x_nchw.shape
    HW = H * W
    HW_pad = ((HW + 127) // 128) * 128            # lane-dense stores
    Cr = w1.shape[1]

    x_flat = x_nchw.reshape(B, C, HW)
    if HW_pad != HW:
        x_flat = jnp.pad(x_flat, ((0, 0), (0, 0), (0, HW_pad - HW)))
    b1_2d = b1.reshape(1, Cr)
    b2_2d = b2.reshape(1, C)

    itemsize = x_flat.dtype.itemsize
    eff_itemsize = max(itemsize, 4)               # f32 intermediates for bf16/fp8
    per_sample = C * HW_pad * eff_itemsize

    # ---- generation-aware tiling / VMEM budget -----------------------------
    vmem_cap = _tpu_vmem_capacity_bytes()
    if vmem_cap <= (64 << 20):
        # v7x-like: 64 MiB VMEM, 2 TensorCores -> >= 2 steps per core.
        target_bytes = 3 << 20
        min_steps = 4
        vmem_ceiling = 48 << 20
    else:
        # v5e / v6e: 128 MiB VMEM, single core -> bigger blocks, fewer steps.
        target_bytes = 10 << 20
        min_steps = 2
        vmem_ceiling = 96 << 20

    BT = _pick_batch_tile(B, per_sample, target_bytes, min_steps)
    grid = (B // BT,)

    # x block + out block, each double-buffered, plus a transient f32 reduce
    # temp, plus resident weights, plus slack.
    block_bytes = BT * C * HW_pad * itemsize
    block_bytes_f32 = BT * C * HW_pad * 4
    w_bytes = (w1.size * w1.dtype.itemsize + b1.size * b1.dtype.itemsize
               + w2.size * w2.dtype.itemsize + b2.size * b2.dtype.itemsize)
    vmem_needed = 4 * block_bytes + block_bytes_f32 + 2 * w_bytes + (2 << 20)
    vmem_limit = int(min(vmem_ceiling, max(vmem_needed, 16 << 20)))

    cost = pl.CostEstimate(
        flops=3 * B * C * HW_pad + 4 * B * C * Cr,
        transcendentals=B * (C + Cr),
        bytes_accessed=2 * B * C * HW_pad * itemsize + w_bytes,
    )

    kernel = functools.partial(se_block_kernel, inv_hw=float(1.0 / HW))

    out_flat = pl.pallas_call(
        kernel,
        out_shape=jax.ShapeDtypeStruct((B, C, HW_pad), x_flat.dtype),
        grid=grid,
        in_specs=[
            pl.BlockSpec((BT, C, HW_pad), lambda i: (i, 0, 0)),  # x: streamed
            pl.BlockSpec((C, Cr), lambda i: (0, 0)),             # weights: resident
            pl.BlockSpec((1, Cr), lambda i: (0, 0)),
            pl.BlockSpec((Cr, C), lambda i: (0, 0)),
            pl.BlockSpec((1, C), lambda i: (0, 0)),
        ],
        out_specs=pl.BlockSpec((BT, C, HW_pad), lambda i: (i, 0, 0)),
        compiler_params=pltpu.CompilerParams(
            dimension_semantics=("parallel",),
            vmem_limit_bytes=vmem_limit,
        ),
        cost_estimate=cost,
    )(x_flat, w1, b1_2d, w2, b2_2d)

    if HW_pad != HW:
        out_flat = out_flat[:, :, :HW]
    return out_flat.reshape(B, C, H, W)


def se_block_ref(x_nchw, w1, b1, w2, b2):
    """Pure-JAX reference matching the PyTorch forward."""
    y = jnp.mean(x_nchw, axis=(2, 3))             # AdaptiveAvgPool2d(1) -> (B, C)
    h = y @ w1 + b1
    h = h * jax.nn.sigmoid(h)                     # SiLU
    s = jax.nn.sigmoid(h @ w2 + b2)               # (B, C)
    return x_nchw * s[:, :, None, None]


if __name__ == "__main__":
    def run_case(B, C, H, W, reduction):
        Cr = max(C // reduction, 1)
        key = jax.random.PRNGKey(0)
        kx, k1, k2, k3, k4 = jax.random.split(key, 5)

        x = jax.random.normal(kx, (B, C, H, W), dtype=jnp.float32)
        # torch Linear weights are (out, in); stored pre-transposed for y @ W.
        w1 = jax.random.normal(k1, (C, Cr), dtype=jnp.float32) * 0.1
        b1 = jax.random.normal(k2, (Cr,), dtype=jnp.float32) * 0.01
        w2 = jax.random.normal(k3, (Cr, C), dtype=jnp.float32) * 0.1
        b2 = jax.random.normal(k4, (C,), dtype=jnp.float32) * 0.01

        out = jax.block_until_ready(se_block(x, w1, b1, w2, b2))
        ref = se_block_ref(x, w1, b1, w2, b2)
        assert out.shape == (B, C, H, W)
        assert jnp.allclose(out, ref, atol=1e-5, rtol=1e-5), "mismatch vs reference"

    # SEBlock(channel=64, reduction=16): lane-dense spatial (16x16 = 256).
    run_case(4, 64, 16, 16, 16)
    # Ragged spatial (7x7 = 49 -> padded to 128) exercises the padding path.
    run_case(2, 32, 7, 7, 8)

    print("KERNEL_OK")
</pallas_src>

<mosaic_0001>
module attributes {stable_mosaic.version = 11 : i64} {
  func.func @se_block_kernel(%arg0: i32, %arg1: memref<1x64x256xf32, #tpu.memory_space<vmem>>, %arg2: memref<64x4xf32, #tpu.memory_space<vmem>>, %arg3: memref<1x4xf32, #tpu.memory_space<vmem>>, %arg4: memref<4x64xf32, #tpu.memory_space<vmem>>, %arg5: memref<1x64xf32, #tpu.memory_space<vmem>>, %arg6: memref<1x64x256xf32, #tpu.memory_space<vmem>>) attributes {dimension_semantics = [#tpu.dimension_semantics<parallel>], iteration_bounds = array<i64: 4>, scalar_prefetch = 0 : i64, scratch_operands = 0 : i64, tpu.core_type = #tpu.core_type<tc>, window_params = [{transform_indices = @transform_0, window_bounds = array<i64: 1, 64, 256>}, {pipeline_mode = #tpu.pipeline_mode<synchronous>, transform_indices = @transform_1, window_bounds = array<i64: 64, 4>}, {pipeline_mode = #tpu.pipeline_mode<synchronous>, transform_indices = @transform_2, window_bounds = array<i64: 1, 4>}, {pipeline_mode = #tpu.pipeline_mode<synchronous>, transform_indices = @transform_3, window_bounds = array<i64: 4, 64>}, {pipeline_mode = #tpu.pipeline_mode<synchronous>, transform_indices = @transform_4, window_bounds = array<i64: 1, 64>}, {transform_indices = @transform_5, window_bounds = array<i64: 1, 64, 256>}]} {
    %c0 = arith.constant 0 : index
    %c0_0 = arith.constant 0 : index
    %c0_1 = arith.constant 0 : index
    %0 = vector.load %arg1[%c0, %c0_0, %c0_1] : memref<1x64x256xf32, #tpu.memory_space<vmem>>, vector<1x64x256xf32>
    %cst = arith.constant dense<0.000000e+00> : vector<1x64xf32>
    %1 = vector.multi_reduction <add>, %0, %cst [2] : vector<1x64x256xf32> to vector<1x64xf32>
    %cst_2 = arith.constant 3.906250e-03 : f32
    %2 = vector.broadcast %cst_2 : f32 to vector<1x64xf32>
    %3 = arith.mulf %1, %2 : vector<1x64xf32>
    %c0_3 = arith.constant 0 : index
    %c0_4 = arith.constant 0 : index
    %4 = vector.load %arg2[%c0_3, %c0_4] : memref<64x4xf32, #tpu.memory_space<vmem>>, vector<64x4xf32>
    %cst_5 = arith.constant dense<0.000000e+00> : vector<1x4xf32>
    %5 = tpu.matmul %3, %4, %cst_5 {dimension_numbers = #tpu.dot_dimension_numbers<[1], [0], [0], [1], [0, 0, 1, 1], [], []>} : vector<1x64xf32>, vector<64x4xf32>, vector<1x4xf32> -> vector<1x4xf32>
    %c0_6 = arith.constant 0 : index
    %c0_7 = arith.constant 0 : index
    %6 = vector.load %arg3[%c0_6, %c0_7] : memref<1x4xf32, #tpu.memory_space<vmem>>, vector<1x4xf32>
    %7 = arith.addf %5, %6 : vector<1x4xf32>
    %8 = arith.negf %7 : vector<1x4xf32>
    %9 = math.exp %8 : vector<1x4xf32>
    %cst_8 = arith.constant 1.000000e+00 : f32
    %10 = vector.broadcast %cst_8 : f32 to vector<1x4xf32>
    %11 = arith.addf %10, %9 : vector<1x4xf32>
    %12 = arith.divf %10, %11 : vector<1x4xf32>
    %13 = arith.mulf %7, %12 : vector<1x4xf32>
    %c0_9 = arith.constant 0 : index
    %c0_10 = arith.constant 0 : index
    %14 = vector.load %arg4[%c0_9, %c0_10] : memref<4x64xf32, #tpu.memory_space<vmem>>, vector<4x64xf32>
    %cst_11 = arith.constant dense<0.000000e+00> : vector<1x64xf32>
    %15 = tpu.matmul %13, %14, %cst_11 {dimension_numbers = #tpu.dot_dimension_numbers<[1], [0], [0], [1], [0, 0, 1, 1], [], []>} : vector<1x4xf32>, vector<4x64xf32>, vector<1x64xf32> -> vector<1x64xf32>
    %c0_12 = arith.constant 0 : index
    %c0_13 = arith.constant 0 : index
    %16 = vector.load %arg5[%c0_12, %c0_13] : memref<1x64xf32, #tpu.memory_space<vmem>>, vector<1x64xf32>
    %17 = arith.addf %15, %16 : vector<1x64xf32>
    %18 = arith.negf %17 : vector<1x64xf32>
    %19 = math.exp %18 : vector<1x64xf32>
    %cst_14 = arith.constant 1.000000e+00 : f32
    %20 = vector.broadcast %cst_14 : f32 to vector<1x64xf32>
    %21 = arith.addf %20, %19 : vector<1x64xf32>
    %22 = arith.divf %20, %21 : vector<1x64xf32>
    %c0_15 = arith.constant 0 : index
    %c0_16 = arith.constant 0 : index
    %c0_17 = arith.constant 0 : index
    %23 = vector.load %arg1[%c0_15, %c0_16, %c0_17] : memref<1x64x256xf32, #tpu.memory_space<vmem>>, vector<1x64x256xf32>
    %24 = vector.shape_cast %22 : vector<1x64xf32> to vector<1x64x1xf32>
    %25 = vector.broadcast %24 : vector<1x64x1xf32> to vector<1x64x256xf32>
    %26 = arith.mulf %23, %25 : vector<1x64x256xf32>
    %c0_18 = arith.constant 0 : index
    %c0_19 = arith.constant 0 : index
    %c0_20 = arith.constant 0 : index
    %27 = vector.load %arg6[%c0_18, %c0_19, %c0_20] : memref<1x64x256xf32, #tpu.memory_space<vmem>>, vector<1x64x256xf32>
    tpu.vector_store %arg6[%c0_18, %c0_19, %c0_20], %26 {strides = array<i32>} : memref<1x64x256xf32, #tpu.memory_space<vmem>>, vector<1x64x256xf32>,
    return
  }
  func.func @transform_0(%arg0: i32) -> (i32, i32, i32) {
    %c0_i32 = arith.constant 0 : i32
    %c0_i32_0 = arith.constant 0 : i32
    %c0_i32_1 = arith.constant 0 : i32
    return %arg0, %c0_i32, %c0_i32_0 : i32, i32, i32
  }
  func.func @transform_1(%arg0: i32) -> (i32, i32) {
    %c0_i32 = arith.constant 0 : i32
    %c0_i32_0 = arith.constant 0 : i32
    %c0_i32_1 = arith.constant 0 : i32
    return %c0_i32, %c0_i32_0 : i32, i32
  }
  func.func @transform_2(%arg0: i32) -> (i32, i32) {
    %c0_i32 = arith.constant 0 : i32
    %c0_i32_0 = arith.constant 0 : i32
    %c0_i32_1 = arith.constant 0 : i32
    return %c0_i32, %c0_i32_0 : i32, i32
  }
  func.func @transform_3(%arg0: i32) -> (i32, i32) {
    %c0_i32 = arith.constant 0 : i32
    %c0_i32_0 = arith.constant 0 : i32
    %c0_i32_1 = arith.constant 0 : i32
    return %c0_i32, %c0_i32_0 : i32, i32
  }
  func.func @transform_4(%arg0: i32) -> (i32, i32) {
    %c0_i32 = arith.constant 0 : i32
    %c0_i32_0 = arith.constant 0 : i32
    %c0_i32_1 = arith.constant 0 : i32
    return %c0_i32, %c0_i32_0 : i32, i32
  }
  func.func @transform_5(%arg0: i32) -> (i32, i32, i32) {
    %c0_i32 = arith.constant 0 : i32
    %c0_i32_0 = arith.constant 0 : i32
    %c0_i32_1 = arith.constant 0 : i32
    return %arg0, %c0_i32, %c0_i32_0 : i32, i32, i32
  }
}

</mosaic_0001>

<bundles_post_ra>
// kernel: tpu_custom_call.1
= control target key start
LH: loop header
LB: loop body
LE: loop exit
PB: predicated region body
PF: predicated region fallthrough
CT: control target
= control target key end

     0   :  { %10 = vsyncpa [#allocation3], 0  ;;  %s1070_s0 = inlined_call_operand.hbm [shape: f32[4,64,256], index: 0, kind: input, shape index: {}]   ;;  %s1071_s1 = inlined_call_operand.vmem [shape: f32[64,4], index: 1, kind: input, shape index: {}]   ;;  %s1072_s2 = inlined_call_operand.vmem [shape: f32[1,4], index: 2, kind: input, shape index: {}]   ;;  %s1073_s3 = inlined_call_operand.vmem [shape: f32[4,64], index: 3, kind: input, shape index: {}]   ;;  %s1074_s4 = inlined_call_operand.vmem [shape: f32[1,64], index: 4, kind: input, shape index: {}]   ;;  %s1075_s5 = inlined_call_operand.hbm [shape: f32[4,64,256], index: 5, kind: output, shape index: {}]  }
   0x1   :  { %12 = vsyncpa [#allocation3 + $0x1], 0 }
   0x2   :  { %13 = vsyncpa [#allocation4], 0 }
   0x3   :  { %15 = vsyncpa [#allocation4 + $0x1], 0  ;;  %s823_s18 = smov 0   ;;  %s825_s19 = smov 0  }
   0x4   :  { %s827_s20 = smov 0   ;;  %s829_s21 = smov 0  }
   0x5 LB: > { %s844_s22 = sadd.s32 4294967295, %s787_s21   ;;  %s603_s23 = sadd.s32 4294967294, %s787_s21   ;;  %s787_s21 = sphi %s829_s21, %s1084_s21   ;;  %s783_s20 = sphi %s827_s20, %s1083_s20   ;;  %s779_s19 = sphi %s825_s19, %s1082_s19   ;;  %s775_s18 = sphi %s823_s18, %s1081_s18  }
   0x6   : > { %s848_s24 = sadd.s32 1, %s787_s21   ;;  %s28_s25 = sadd.s32 1, %s783_s20 }
   0x7   : > { %s25_s26 = ssub.s32 %s787_s21, %s848_s24  ;;  %p35_p0 = scmp.ne.s32.totalorder %s783_s20, %s779_s19 }
   0x8   : > { %p26_p1 = scmp.eq.s32.totalorder %s25_s26, 0  ;;  %p36_p2 = scmp.eq.s32.totalorder %s787_s21, 0 }
   0x9   : > { %p41_p3 = scmp.ne.s32.totalorder %s779_s19, %s775_s18  ;;  %p42_p4 = scmp.eq.s32.totalorder %s844_s22, 0 }
   0xa   : > { %s860_s27 = scalar_select %p26_p1, %s783_s20, %s28_s25  }
   0xb   : > { %p862_p5 = por %p36_p2, %p35_p0  ;;  %p866_p6 = por %p42_p4, %p41_p3 }
   0xc   : > { %p149_p7 = scmp.eq.s32.totalorder %s844_s22, 3  ;;  %p155_p8 = scmp.eq.s32.totalorder %s603_s23, 3 }
   0xd   : > { %p636_p9 = scmp.lt.s32.totalorder %s787_s21, 4  ;;  %s187_s7 = sand.u32 1, %s783_s20  }
   0xe   : > { %p872_p10 = por %p149_p7, %p35_p0  ;;  %p876_p11 = por %p155_p8, %p41_p3 }
   0xf   : > { %s622_s8 = sshll.u32 %s787_s21, 7  ;;  %s606_s9 = sshll.u32 %s187_s7, 7 }
  0x10   : > { %s196_s12 = scalar_lea.hbm %s1070_s0, %s622_s8  ;;  %s191_s14 = scalar_lea.vmem [#allocation2], %s606_s9 }
  0x11   : > { %s197_s13 = sshll.u32 %s196_s12, 4  ;;  %s199_s15 = sshll.u32 %s191_s14, 4  ;;  %s198_s13 = int_to_ptr.hbm [resolvable:$true] %s197_s13  ;;  %s200_s15 = int_to_ptr.vmem [resolvable:$true] %s199_s15 }
  0x12   : > { %p887_p12 = pnand %p636_p9, %p862_p5  ;;  %p609_p13 = scmp.ge.s32.totalorder %s787_s21, 1 }
  0x13   : > { %p207_p0 = scmp.lt.s32.totalorder %s787_s21, 5  ;;  %s188_s17 = scalar_lea.sflag [#allocation3], %s187_s7 }
  0x14   : > { %s691_s23 = sshra.s32 %s198_s13, 4  ;;  %p695_p2 = pneg %p887_p12  ;;  %s692_s23 = int_to_ptr.hbm [resolvable:$true] %s691_s23 }
  0x15   : > { %s693_s25 = scalar_lea.hbm %s692_s23, 128  ;;  %s698_s28 = scalar_lea.hbm %s1070_s0, 512 }
  0x16   : > { %p694_p1 = scmp.ne.s32.totalorder %s692_s23, %s693_s25  ;;  %p699_p5 = scmp.lt.s32.totalorder %s692_s23, %s1070_s0 }
  0x17   : > { %p700_p7 = scmp.lt.s32.totalorder %s698_s28, %s693_s25 }
  0x18   : > { %p696_p3 = pnand %p695_p2, %p694_p1 }
  0x19   : > { %p701_p8 = por %p700_p7, %p699_p5 }
  0x1a   : > { %p697_p4 = pneg %p696_p3 }
  0x1c   : > { %p702_p9 = pnand %p701_p8, %p697_p4 }
  0x1e   : > { %705 = shalt.err (!%p702_p9)
}
  0x1f   : > { %s789_s7 = smov 256   ;;  %s790_s11 = smov 16  }
  0x20   : > { %631 = dma.hbm_to_vmem [thread:$0]  (!%p887_p12), %s198_s13, 2048, %s200_s15, %s188_s17, %s789_s7, %s789_s7, %s790_s11  }
  0x21   : > { %p208_p1 = pnand %p609_p13, %p207_p0 }
  0x22   : > { %s908_s12 = sand.u32 (!%p208_p1), 1, %s779_s19  }
  0x23   : > { %211 = sbr.rel (%p208_p1) target bundleno = 652 (0x28c), region = 40  ;;  %s610_s14 = sshll.u32 (!%p208_p1), %s908_s12, 7 }
  0x24   : > { %s214_s23 = scalar_lea.sflag (!%p208_p1), [#allocation3], %s908_s12  ;;  %s217_s25 = scalar_lea.vmem (!%p208_p1), [#allocation2], %s610_s14 }
  0x28   : > { %766 = dma.done.wait (%p866_p6), %s214_s23, 2048  }
  0x29   : > { %768 = vsyncadd (%p866_p6), %s214_s23, 4294965248  ;;  %v918_v0 = vld [vmem:[%s217_s25] sm:$0xff]  ;;  %v920_v1 = vld [vmem:[%s217_s25 + $0x8] sm:$0xff]  ;;  %v310_v32 = vlaneseq  ;;  %vm315_vm0 = vcmask 130112   ;;  %vm319_vm1 = vcmask 195712   ;;  %vm323_vm2 = vcmask 261312  }
  0x2a   : > { %v922_v2 = vld [vmem:[%s217_s25 + $0x20] sm:$0xff]  ;;  %v261_v3 = vadd.f32 %v920_v1, %v918_v0  ;;  %v926_v4 = vld [vmem:[%s217_s25 + $0x28] sm:$0xff]  ;;  %v936_v9 = vld [vmem:[%s217_s25 + $0x10] sm:$0xff]  ;;  %vm327_vm3 = vcmask 326912   ;;  %vm331_vm4 = vcmask 392512   ;;  %vm335_vm5 = vcmask 458112  }
  0x2b   : > { %v928_v5 = vld [vmem:[%s217_s25 + $0x40] sm:$0xff]  ;;  %v930_v6 = vld [vmem:[%s217_s25 + $0x48] sm:$0xff]  ;;  %v267_v7 = vadd.f32 %v926_v4, %v922_v2  ;;  %v938_v10 = vld [vmem:[%s217_s25 + $0x18] sm:$0xff]  ;;  %v311_v36 = vand.u32 127, %v310_v32  ;;  %vm339_vm6 = vcmask 523712   ;;  %vm341_vm7 = vcmask 523264  }
  0x2c   : > { %v273_v8 = vadd.f32 %v930_v6, %v928_v5  ;;  %262 = vadd.xlane.f32.xlu0 %v261_v3  ;;  %v940_v11 = vld [vmem:[%s217_s25 + $0x30] sm:$0xff]  ;;  %v942_v12 = vld [vmem:[%s217_s25 + $0x38] sm:$0xff]  ;;  %v264_v15 = vadd.f32 %v938_v10, %v936_v9  ;;  %v954_v18 = vld [vmem:[%s217_s25 + $0x60] sm:$0xff]  ;;  %vm390_vm8 = vcmask 1043456   ;;  %vm386_vm13 = vcmask 31744   ;;  %s1005_s9 = scalar_lea.vmem [#allocation5], %s610_s14 }
  0x2d   : > { %268 = vadd.xlane.f32.xlu1 %v267_v7  ;;  %v944_v13 = vld [vmem:[%s217_s25 + $0x50] sm:$0xff]  ;;  %v946_v14 = vld [vmem:[%s217_s25 + $0x58] sm:$0xff]  ;;  %v270_v16 = vadd.f32 %v942_v12, %v940_v11  ;;  %v956_v19 = vld [vmem:[%s217_s25 + $0x68] sm:$0xff]  ;;  %v313_v38 = vadd.s32 4294967288, %v311_v36  ;;  %v317_v39 = vadd.s32 4294967280, %v311_v36  ;;  %v321_v42 = vadd.s32 4294967272, %v311_v36 }
  0x2e   : > { %274 = vadd.xlane.f32.xlu2 %v273_v8  ;;  %v276_v17 = vadd.f32 %v946_v14, %v944_v13  ;;  %v958_v20 = vld [vmem:[%s217_s25 + $0x70] sm:$0xff]  ;;  %v960_v21 = vld [vmem:[%s217_s25 + $0x78] sm:$0xff]  ;;  %v279_v22 = vadd.f32 %v956_v19, %v954_v18  ;;  %v298_v26 = vld [vmem:[%s1071_s1 + $0x28] sm:$0xff]  ;;  %v325_v46 = vadd.s32 4294967264, %v311_v36  ;;  %v329_v53 = vadd.s32 4294967256, %v311_v36  ;;  %s623_s14 = sshll.u32 %s844_s22, 7 }
  0x2f   : > { %v282_v23 = vadd.f32 %v960_v21, %v958_v20  ;;  %v300_v24 = vld [vmem:[%s1071_s1 + $0x38] sm:$0xff]  ;;  %v299_v25 = vld [vmem:[%s1071_s1 + $0x30] sm:$0xff]  ;;  %v297_v27 = vld [vmem:[%s1071_s1 + $0x20] sm:$0xff]  ;;  %v333_v59 = vadd.s32 4294967248, %v311_v36  ;;  %v337_v62 = vadd.s32 4294967240, %v311_v36  ;;  %s526_s11 = scalar_lea.hbm %s1075_s5, %s623_s14  ;;  %s527_s23 = sshll.u32 %s1005_s9, 4  ;;  %s528_s23 = int_to_ptr.vmem [resolvable:$true] %s527_s23 }
  0x30   : > { %352 = vmatpush.msra.mxu0 %v300_v24  ;;  %v296_v28 = vld [vmem:[%s1071_s1 + $0x18] sm:$0xff]  ;;  %v295_v29 = vld [vmem:[%s1071_s1 + $0x10] sm:$0xff]  ;;  %v294_v30 = vld [vmem:[%s1071_s1 + $0x8] sm:$0xff]  ;;  %s529_s25 = sshll.u32 %s526_s11, 4  ;;  %s515_s22 = scalar_lea.sflag [#allocation4], %s908_s12  ;;  %s530_s25 = int_to_ptr.hbm [resolvable:$true] %s529_s25 }
  0x31   : > { %v293_v31 = vld [vmem:[%s1071_s1] sm:$0xff]  ;;  %s735_s29 = sshra.s32 %s530_s25, 4  ;;  %s741_s17 = scalar_lea.hbm %s1075_s5, 512  ;;  %s736_s29 = int_to_ptr.hbm [resolvable:$true] %s735_s29 }
  0x32   : > { %353 = vmatpush.msra.mxu0 %v299_v25  ;;  %v301_v24 = vld [vmem:[%s1072_s2] sm:$0x1]  ;;  %s737_s13 = scalar_lea.hbm %s736_s29, 128  ;;  %p742_p0 = scmp.lt.s32.totalorder %s736_s29, %s1075_s5 }
  0x33   : > { %v384_v25 = vld [vmem:[%s1073_s3] sm:$0xf]  ;;  %p738_p6 = scmp.ne.s32.totalorder %s736_s29, %s737_s13  ;;  %p743_p2 = scmp.lt.s32.totalorder %s741_s17, %s737_s13 }
  0x34   : > { %265 = vadd.xlane.f32.xlu0 %v264_v15  ;;  %354 = vmatpush.msra.mxu0 %v298_v26 }
  0x35   : > { %271 = vadd.xlane.f32.xlu1 %v270_v16  ;;  %614 = vmatpush.msk.msra.mxu1 %vm390_vm8, %v384_v25  ;;  %p739_p12 = pnand %p738_p6, %p872_p10  ;;  %p744_p3 = por %p743_p2, %p742_p0 }
  0x36   : > { %277 = vadd.xlane.f32.xlu2 %v276_v17  ;;  %355 = vmatpush.msra.mxu0 %v297_v27 }
  0x37   : > { %p740_p13 = pneg %p739_p12 }
  0x38   : > { %356 = vmatpush.msra.mxu0 %v296_v28 }
  0x39   : > { %p745_p4 = pnand %p744_p3, %p740_p13 }
  0x3a   : > { %357 = vmatpush.msra.mxu0 %v295_v29 }
  0x3c   : > { %280 = vadd.xlane.f32.xlu0 %v279_v22  ;;  %358 = vmatpush.msra.mxu0 %v294_v30 }
  0x3d   : > { %283 = vadd.xlane.f32.xlu1 %v282_v23 }
  0x3e   : > { %359 = vmatpush.msra.mxu0 %v293_v31 }
  0x9f   : > { %v263_v33 = vpop.xlane.xlu0 %262 }
  0xa0   : > { %v269_v34 = vpop.xlane.xlu1 %268  ;;  %v285_v37 = vmul.f32 0.00390625, %v263_v33 }
  0xa1   : > { %v275_v35 = vpop.xlane.xlu2 %274  ;;  %v287_v40 = vmul.f32 0.00390625, %v269_v34 }
  0xa2   : > { %v312_v48 = vperm.slane %v285_v37, %v311_v36  ;;  %v289_v49 = vmul.f32 0.00390625, %v275_v35 }
  0xa3   : > { %v318_v51 = vperm.slane %v287_v40, %v317_v39 }
  0xa4   : > { %v326_v57 = vperm.slane %v289_v49, %v325_v46  ;;  %v385_v46 = vld [vmem:[%s1074_s4] sm:$0x1] }
  0xa7   : > { %v266_v41 = vpop.xlane.xlu0 %265 }
  0xa8   : > { %v286_v43 = vmul.f32 0.00390625, %v266_v41  ;;  %v272_v44 = vpop.xlane.xlu1 %271 }
  0xa9   : > { %v278_v45 = vpop.xlane.xlu2 %277  ;;  %v288_v47 = vmul.f32 0.00390625, %v272_v44 }
  0xaa   : > { %v314_v50 = vperm.slane %v286_v43, %v313_v38  ;;  %v290_v54 = vmul.f32 0.00390625, %v278_v45  ;;  %v435_v43 = vshrl.u32 %v310_v32, 7 }
  0xab   : > { %v322_v52 = vperm.slane %v288_v47, %v321_v42 }
  0xac   : > { %v316_v55 = vsel %vm315_vm0, %v314_v50, %v312_v48  ;;  %v330_v60 = vperm.slane %v290_v54, %v329_v53  ;;  %674 = vset.pattern.permute.xlu2 %v435_v43  ;;  %v448_v44 = vadd.s32 16, %v435_v43  ;;  %v442_v45 = vadd.s32 8, %v435_v43 }
  0xad   : > { %v320_v56 = vsel %vm319_vm1, %v318_v51, %v316_v55 }
  0xae   : > { %v324_v58 = vsel %vm323_vm2, %v322_v52, %v320_v56  ;;  %676 = vset.pattern.permute.xlu1 %v448_v44  ;;  %675 = vset.pattern.permute.xlu0 %v442_v45 }
  0xaf   : > { %v281_v61 = vpop.xlane.xlu0 %280  ;;  %v328_v7 = vsel %vm327_vm3, %v326_v57, %v324_v58 }
  0xb0   : > { %v291_v63 = vmul.f32 0.00390625, %v281_v61  ;;  %v284_v3 = vpop.xlane.xlu1 %283  ;;  %v332_v17 = vsel %vm331_vm4, %v330_v60, %v328_v7  ;;  %v460_v7 = vadd.s32 32, %v435_v43 }
  0xb1   : > { %v292_v8 = vmul.f32 0.00390625, %v284_v3  ;;  %v478_v3 = vadd.s32 56, %v435_v43 }
  0xb2   : > { %v334_v15 = vperm.slane %v291_v63, %v333_v59  ;;  %v454_v63 = vadd.s32 24, %v435_v43 }
  0xb3   : > { %v338_v16 = vperm.slane %v292_v8, %v337_v62  ;;  %v466_v62 = vadd.s32 40, %v435_v43  ;;  %v472_v8 = vadd.s32 48, %v435_v43 }
  0xb4   : > { %v336_v22 = vsel %vm335_vm5, %v334_v15, %v332_v17 }
  0xb5   : > { %v340_v23 = vsel %vm339_vm6, %v338_v16, %v336_v22 }
  0xb6   : > { %612 = vmatmul.msk.f32.vlgmr.msra.gmra.mxu0 %vm341_vm7, %v340_v23 }
 0x133   : > { %v361_v26 = vpop.f32.mrf.mxu0 }
 0x134   : > { %v362_v27 = vadd.f32 %v361_v26, %v301_v24 }
 0x136   : > { %v613_v28 = vmul.f32 -1.442695, %v362_v27 }
 0x138   : > { %683 = vpow2.f32 %v613_v28 }
 0x13e   : > { %v684_v29 = vpop.eup %683 }
 0x13f   : > { %v367_v30 = vadd.f32 1.0, %v684_v29 }
 0x141   : > { %685 = vrcp.f32 %v367_v30  ;;  %v379_v35 = vand.u32 2147483648, %v367_v30  ;;  %v377_v37 = vand.u32 2147483647, %v367_v30  ;;  %vm373_vm10 = vweird.f32 %v367_v30 }
 0x143   : > { %v380_v39 = vor.u32 1.1754944e-38, %v379_v35  ;;  %vm378_vm12 = vcmp.eq.f32.partialorder %v377_v37, 8.507059e+37 }
 0x147   : > { %v686_v31 = vpop.eup %685 }
 0x148   : > { %v369_v33 = vmul.f32 %v686_v31, %v367_v30  ;;  %vm374_vm9 = vweird.f32 %v686_v31 }
 0x149   : > { %vm375_vm11 = vmor %vm373_vm10, %vm374_vm9 }
 0x14a   : > { %v370_v34 = vsub.f32 1.0, %v369_v33 }
 0x14c   : > { %v371_v36 = vmul.f32 %v686_v31, %v370_v34 }
 0x14e   : > { %v372_v38 = vadd.f32 %v686_v31, %v371_v36 }
 0x150   : > { %v376_v40 = vsel %vm375_vm11, %v686_v31, %v372_v38 }
 0x151   : > { %v381_v41 = vsel %vm378_vm12, %v380_v39, %v376_v40 }
 0x152   : > { %v383_v42 = vmul.f32 %v381_v41, %v362_v27 }
 0x154   : > { %615 = vmatmul.msk.f32.vlgmr.msra.gmra.mxu1 %vm386_vm13, %v383_v42 }
 0x1d1   : > { %v411_v47 = vpop.f32.mrf.mxu1 }
 0x1d2   : > { %v412_v48 = vadd.f32 %v411_v47, %v385_v46 }
 0x1d4   : > { %v616_v49 = vmul.f32 -1.442695, %v412_v48 }
 0x1d6   : > { %687 = vpow2.f32 %v616_v49 }
 0x1dc   : > { %v688_v50 = vpop.eup %687 }
 0x1dd   : > { %v417_v51 = vadd.f32 1.0, %v688_v50 }
 0x1df   : > { %689 = vrcp.f32 %v417_v51  ;;  %v429_v32 = vand.u32 2147483648, %v417_v51  ;;  %v427_v56 = vand.u32 2147483647, %v417_v51  ;;  %vm423_vm15 = vweird.f32 %v417_v51 }
 0x1e1   : > { %v430_v58 = vor.u32 1.1754944e-38, %v429_v32  ;;  %vm428_vm1 = vcmp.eq.f32.partialorder %v427_v56, 8.507059e+37 }
 0x1e5   : > { %v690_v52 = vpop.eup %689 }
 0x1e6   : > { %v419_v53 = vmul.f32 %v690_v52, %v417_v51  ;;  %vm424_vm14 = vweird.f32 %v690_v52 }
 0x1e7   : > { %vm425_vm0 = vmor %vm423_vm15, %vm424_vm14 }
 0x1e8   : > { %v420_v54 = vsub.f32 1.0, %v419_v53 }
 0x1ea   : > { %v421_v55 = vmul.f32 %v690_v52, %v420_v54 }
 0x1ec   : > { %v422_v57 = vadd.f32 %v690_v52, %v421_v55 }
 0x1ee   : > { %v426_v59 = vsel %vm425_vm0, %v690_v52, %v422_v57 }
 0x1ef   : > { %v431_v60 = vsel %vm428_vm1, %v430_v58, %v426_v59 }
 0x1f0   : > { %v433_v61 = vperm.slane %v431_v60, 0 }
 0x1f2   : > { %450 = vperm.xlu1 %676, %v433_v61   ;;  %444 = vperm.xlu0 %675, %v433_v61  }
 0x1f3   : > { %438 = vperm.xlu2 %674, %v433_v61  }
 0x1fa   : > { %679 = vset.pattern.permute.xlu1 %v466_v62  ;;  %682 = vset.pattern.permute.xlu0 %v478_v3 }
 0x1fb   : > { %677 = vset.pattern.permute.xlu2 %v454_v63 }
 0x202   : > { %468 = vperm.xlu1 %679, %v433_v61  }
 0x203   : > { %456 = vperm.xlu2 %677, %v433_v61  }
 0x20a   : > { %681 = vset.pattern.permute.xlu1 %v478_v3 }
 0x20b   : > { %678 = vset.pattern.permute.xlu2 %v460_v7 }
 0x212   : > { %480 = vperm.xlu1 %681, %v433_v61  }
 0x213   : > { %462 = vperm.xlu2 %678, %v433_v61  }
 0x21b   : > { %680 = vset.pattern.permute.xlu2 %v472_v8 }
 0x223   : > { %474 = vperm.xlu2 %680, %v433_v61  }
 0x24d   : > { %v439_v15 = vpop.permute.xlu2 %438 }
 0x24e   : > { %v482_v16 = vmul.f32 %v439_v15, %v918_v0  ;;  %v483_v17 = vmul.f32 %v439_v15, %v920_v1 }
 0x250   : > { %498 = vst [vmem:[%s1005_s9] sm:$0xff] %v482_v16 }
 0x251   : > { %499 = vst [vmem:[%s1005_s9 + $0x8] sm:$0xff] %v483_v17 }
 0x25d   : > { %v457_v22 = vpop.permute.xlu2 %456 }
 0x25e   : > { %v488_v23 = vmul.f32 %v457_v22, %v940_v11  ;;  %v489_v0 = vmul.f32 %v457_v22, %v942_v12 }
 0x260   : > { %504 = vst [vmem:[%s1005_s9 + $0x30] sm:$0xff] %v488_v23 }
 0x261   : > { %505 = vst [vmem:[%s1005_s9 + $0x38] sm:$0xff] %v489_v0 }
 0x264   : > { %v451_v1 = vpop.permute.xlu1 %450  ;;  %v445_v24 = vpop.permute.xlu0 %444 }
 0x265   : > { %v486_v25 = vmul.f32 %v451_v1, %v922_v2  ;;  %v487_v26 = vmul.f32 %v451_v1, %v926_v4  ;;  %v484_v27 = vmul.f32 %v445_v24, %v936_v9  ;;  %v485_v28 = vmul.f32 %v445_v24, %v938_v10 }
 0x267   : > { %502 = vst [vmem:[%s1005_s9 + $0x20] sm:$0xff] %v486_v25 }
 0x268   : > { %503 = vst [vmem:[%s1005_s9 + $0x28] sm:$0xff] %v487_v26 }
 0x269   : > { %500 = vst [vmem:[%s1005_s9 + $0x10] sm:$0xff] %v484_v27 }
 0x26a   : > { %501 = vst [vmem:[%s1005_s9 + $0x18] sm:$0xff] %v485_v28 }
 0x26d   : > { %v463_v11 = vpop.permute.xlu2 %462 }
 0x26e   : > { %v490_v12 = vmul.f32 %v463_v11, %v928_v5  ;;  %v491_v2 = vmul.f32 %v463_v11, %v930_v6 }
 0x270   : > { %506 = vst [vmem:[%s1005_s9 + $0x40] sm:$0xff] %v490_v12 }
 0x271   : > { %507 = vst [vmem:[%s1005_s9 + $0x48] sm:$0xff] %v491_v2 }
 0x274   : > { %v469_v4 = vpop.permute.xlu1 %468 }
 0x275   : > { %v492_v9 = vmul.f32 %v469_v4, %v944_v13  ;;  %v493_v29 = vmul.f32 %v469_v4, %v946_v14 }
 0x277   : > { %508 = vst [vmem:[%s1005_s9 + $0x50] sm:$0xff] %v492_v9 }
 0x278   : > { %509 = vst [vmem:[%s1005_s9 + $0x58] sm:$0xff] %v493_v29 }
 0x27d   : > { %v475_v10 = vpop.permute.xlu2 %474 }
 0x27e   : > { %v494_v30 = vmul.f32 %v475_v10, %v954_v18  ;;  %v495_v5 = vmul.f32 %v475_v10, %v956_v19 }
 0x280   : > { %510 = vst [vmem:[%s1005_s9 + $0x60] sm:$0xff] %v494_v30 }
 0x281   : > { %511 = vst [vmem:[%s1005_s9 + $0x68] sm:$0xff] %v495_v5 }
 0x284   : > { %v481_v6 = vpop.permute.xlu1 %480 }
 0x285   : > { %v496_v13 = vmul.f32 %v481_v6, %v958_v20  ;;  %v497_v14 = vmul.f32 %v481_v6, %v960_v21 }
 0x287   : > { %512 = vst [vmem:[%s1005_s9 + $0x70] sm:$0xff] %v496_v13 }
 0x288   : > { %513 = vst [vmem:[%s1005_s9 + $0x78] sm:$0xff] %v497_v14 }
 0x289   : > { %748 = shalt.err (!%p745_p4)
}
 0x28a   : > { %s791_s12 = smov 256   ;;  %s792_s28 = smov 16  }
 0x28b   : > { %626 = dma.vmem_to_hbm [thread:$0]  (%p872_p10), %s528_s23, 2048, %s530_s25, %s515_s22, %s791_s12, %s791_s12, %s792_s28  }
 0x28c PF: > { %p637_p5 = scmp.ge.s32.totalorder %s787_s21, 2  ;;  %s544_s9 = sand.u32 1, %s775_s18  }
 0x28d   : > { %s545_s14 = scalar_lea.sflag [#allocation4], %s544_s9 }
 0x28e   : > { %p633_p7 = pnand %p637_p5, %p876_p11 }
 0x290   : > { %p634_p8 = pneg %p633_p7 }
 0x292   : > { %770 = dma.done.wait (%p634_p8), %s545_s14, 2048  }
 0x293   : > { %772 = vsyncadd (%p634_p8), %s545_s14, 4294965248  ;;  %p18_p9 = scmp.ge.s32.totalorder %s848_s24, 6   ;;  %s1081_s18 = smov %s779_s19 }
 0x294   : > { %s1082_s19 = smov %s783_s20  ;;  %s1083_s20 = smov %s860_s27 }
 0x295   : > { %s1084_s21 = smov %s848_s24  ;;  %20 = sbr.rel (!%p18_p9) target bundleno = 5 (0x5), region = 85 }
 0x29a   :  { %551 = vsyncpa [#allocation3], 1 }
 0x29b   :  { %553 = vsyncpa [#allocation3 + $0x1], 1 }
 0x29c   :  { %554 = vsyncpa [#allocation4], 1 }
 0x29d   :  { %556 = vsyncpa [#allocation4 + $0x1], 1 }

</bundles_post_ra>
